<compile_context>
chip_gen: v6e
topology: v6e:2x2x1
jax: 0.10.0
libtpu: 0.0.40
codegen_flags: <defaults>
</compile_context>

<pallas_src>
import math

import jax
import jax.numpy as jnp
from jax.experimental import pallas as pl
from jax.experimental.pallas import tpu as pltpu


# ------------------------------ Pallas kernel ------------------------------

def _graph_conv_kernel(x_ref, w1_ref, b1_ref, w2_ref, b2_ref, o_ref):
    """Fused _GraphConv forward for one row block.

    x_ref/o_ref: (R, N); w*: (N, N) folded = (A_sem*W)@M; b*: (1, N).
    """
    x = x_ref[...].astype(jnp.float32)
    # gconv1 (single folded matmul) + bias + tanh.  Dropout(p=0) == identity.
    y1 = jnp.tanh(
        jnp.dot(x, w1_ref[...], preferred_element_type=jnp.float32) + b1_ref[...])
    # gconv2 + bias + tanh + residual skip.
    y2 = jnp.tanh(
        jnp.dot(y1, w2_ref[...], preferred_element_type=jnp.float32) + b2_ref[...])
    o_ref[...] = (y2 + x).astype(o_ref.dtype)


# ------------------------- parameter preparation ---------------------------

def _nan0(a):
    # torch.where(torch.isnan(p), 0, p) equivalent.
    return jnp.where(jnp.isnan(a), jnp.zeros_like(a), a)


def prepare_params(params):
    """One-time param prep hoisted out of the per-forward path: NaN-clean
    A_sem / W / M (as the reference forward does) and fold the whole linear
    map into a single matrix per SemskeConv:  W_folded = (A_sem * W) @ M."""
    prepped = {}
    for name in ("gconv1", "gconv2"):
        p = params[name]
        adj_w = _nan0(p["A_sem"]) * _nan0(p["W"])
        w_folded = jnp.dot(adj_w, _nan0(p["M"]),
                           preferred_element_type=jnp.float32)
        prepped[name] = {
            "w_folded": w_folded.astype(jnp.float32),
            "bias": p["bias"].reshape(1, -1).astype(jnp.float32),
        }
    return prepped


# ------------------------------ forward pass -------------------------------

def _pick_row_block(rows, cap):
    """Largest multiple-of-8 divisor of `rows` that is <= cap; else full rows
    (a full-extent block is always layout-legal)."""
    if rows <= cap:
        return rows
    b = (cap // 8) * 8
    while b >= 8:
        if rows % b == 0:
            return b
        b -= 8
    return rows


def graph_conv_forward(x, prepped, row_block=1024):
    """_GraphConv.forward.  x: (B, F, node_num) -> (B, F, node_num)."""
    B, F, N = x.shape
    rows = B * F
    x2 = x.reshape(rows, N)                      # contiguous, free reshape
    g1, g2 = prepped["gconv1"], prepped["gconv2"]

    bt = _pick_row_block(rows, row_block)        # == rows at small shapes
    num_blocks = rows // bt

    row_spec = pl.BlockSpec((bt, N), lambda i: (i, 0))       # streams with grid
    mat_spec = pl.BlockSpec((N, N), lambda i: (0, 0))        # VMEM-resident
    bias_spec = pl.BlockSpec((1, N), lambda i: (0, 0))       # VMEM-resident

    out2 = pl.pallas_call(
        _graph_conv_kernel,
        out_shape=jax.ShapeDtypeStruct((rows, N), x.dtype),
        grid=(num_blocks,),
        in_specs=[row_spec,
                  mat_spec, bias_spec,
                  mat_spec, bias_spec],
        out_specs=row_spec,
        compiler_params=pltpu.CompilerParams(
            dimension_semantics=("parallel",)),
    )(x2, g1["w_folded"], g1["bias"], g2["w_folded"], g2["bias"])
    return out2.reshape(B, F, N)


# --------------------------- pure-JAX reference ----------------------------

def reference_forward(x, params):
    def semske(inp, p):
        aw = _nan0(p["A_sem"]) * _nan0(p["W"])
        return inp @ aw @ _nan0(p["M"]) + p["bias"]
    y = jnp.tanh(semske(x, params["gconv1"]))
    y = jnp.tanh(semske(y, params["gconv2"]))
    return y + x


# -------------------------- deterministic params ---------------------------

def init_semske(key, node_num):
    # Reference init is all-zeros for A_sem/W/M (which would make the test
    # trivial); use small random values so the matmuls are exercised, plus a
    # few injected NaNs to cover the in-forward NaN-cleaning path.
    k1, k2, k3, k4 = jax.random.split(key, 4)
    stdv = 1.0 / math.sqrt(node_num)
    A = jax.random.normal(k1, (node_num, node_num), jnp.float32) * stdv
    W = jax.random.normal(k2, (node_num, node_num), jnp.float32) * stdv
    M = jax.random.normal(k3, (node_num, node_num), jnp.float32) * stdv
    A = A.at[0, 0].set(jnp.nan)
    W = W.at[1, 2].set(jnp.nan)
    M = M.at[3, 4].set(jnp.nan)
    bias = jax.random.uniform(k4, (node_num,), jnp.float32, -stdv, stdv)
    return {"A_sem": A, "W": W, "M": M, "bias": bias}


# ---------------------------------- main -----------------------------------

if __name__ == "__main__":
    B, HIDDEN, NODE_N = 2, 32, 16          # batch, hidden_feature, node_num
    key = jax.random.PRNGKey(0)
    kx, k1, k2 = jax.random.split(key, 3)
    x = jax.random.normal(kx, (B, HIDDEN, NODE_N), jnp.float32)
    params = {"gconv1": init_semske(k1, NODE_N),
              "gconv2": init_semske(k2, NODE_N)}

    prepped = prepare_params(params)
    out = graph_conv_forward(x, prepped)
    out = jax.block_until_ready(out)

    ref = reference_forward(x, params)
    assert out.shape == (B, HIDDEN, NODE_N), out.shape
    assert out.dtype == x.dtype, out.dtype
    assert jnp.all(jnp.isfinite(out))
    assert jnp.allclose(out, ref, atol=1e-5, rtol=1e-5), \
        float(jnp.max(jnp.abs(out - ref)))
    print("KERNEL_OK")
</pallas_src>

<mosaic_0001>
module attributes {stable_mosaic.version = 11 : i64} {
  func.func @_graph_conv_kernel(%arg0: i32, %arg1: memref<64x16xf32, #tpu.memory_space<vmem>>, %arg2: memref<16x16xf32, #tpu.memory_space<vmem>>, %arg3: memref<1x16xf32, #tpu.memory_space<vmem>>, %arg4: memref<16x16xf32, #tpu.memory_space<vmem>>, %arg5: memref<1x16xf32, #tpu.memory_space<vmem>>, %arg6: memref<64x16xf32, #tpu.memory_space<vmem>>) attributes {dimension_semantics = [#tpu.dimension_semantics<parallel>], iteration_bounds = array<i64: 1>, scalar_prefetch = 0 : i64, scratch_operands = 0 : i64, tpu.core_type = #tpu.core_type<tc>, window_params = [{transform_indices = @transform_0, window_bounds = array<i64: 64, 16>}, {pipeline_mode = #tpu.pipeline_mode<synchronous>, transform_indices = @transform_1, window_bounds = array<i64: 16, 16>}, {pipeline_mode = #tpu.pipeline_mode<synchronous>, transform_indices = @transform_2, window_bounds = array<i64: 1, 16>}, {pipeline_mode = #tpu.pipeline_mode<synchronous>, transform_indices = @transform_3, window_bounds = array<i64: 16, 16>}, {pipeline_mode = #tpu.pipeline_mode<synchronous>, transform_indices = @transform_4, window_bounds = array<i64: 1, 16>}, {transform_indices = @transform_5, window_bounds = array<i64: 64, 16>}]} {
    %c0 = arith.constant 0 : index
    %c0_0 = arith.constant 0 : index
    %0 = vector.load %arg1[%c0, %c0_0] : memref<64x16xf32, #tpu.memory_space<vmem>>, vector<64x16xf32>
    %c0_1 = arith.constant 0 : index
    %c0_2 = arith.constant 0 : index
    %1 = vector.load %arg2[%c0_1, %c0_2] : memref<16x16xf32, #tpu.memory_space<vmem>>, vector<16x16xf32>
    %cst = arith.constant dense<0.000000e+00> : vector<64x16xf32>
    %2 = tpu.matmul %0, %1, %cst {dimension_numbers = #tpu.dot_dimension_numbers<[1], [0], [0], [1], [0, 0, 1, 1], [], []>} : vector<64x16xf32>, vector<16x16xf32>, vector<64x16xf32> -> vector<64x16xf32>
    %c0_3 = arith.constant 0 : index
    %c0_4 = arith.constant 0 : index
    %3 = vector.load %arg3[%c0_3, %c0_4] : memref<1x16xf32, #tpu.memory_space<vmem>>, vector<1x16xf32>
    %4 = vector.broadcast %3 : vector<1x16xf32> to vector<64x16xf32>
    %5 = arith.addf %2, %4 : vector<64x16xf32>
    %6 = math.tanh %5 : vector<64x16xf32>
    %c0_5 = arith.constant 0 : index
    %c0_6 = arith.constant 0 : index
    %7 = vector.load %arg4[%c0_5, %c0_6] : memref<16x16xf32, #tpu.memory_space<vmem>>, vector<16x16xf32>
    %cst_7 = arith.constant dense<0.000000e+00> : vector<64x16xf32>
    %8 = tpu.matmul %6, %7, %cst_7 {dimension_numbers = #tpu.dot_dimension_numbers<[1], [0], [0], [1], [0, 0, 1, 1], [], []>} : vector<64x16xf32>, vector<16x16xf32>, vector<64x16xf32> -> vector<64x16xf32>
    %c0_8 = arith.constant 0 : index
    %c0_9 = arith.constant 0 : index
    %9 = vector.load %arg5[%c0_8, %c0_9] : memref<1x16xf32, #tpu.memory_space<vmem>>, vector<1x16xf32>
    %10 = vector.broadcast %9 : vector<1x16xf32> to vector<64x16xf32>
    %11 = arith.addf %8, %10 : vector<64x16xf32>
    %12 = math.tanh %11 : vector<64x16xf32>
    %13 = arith.addf %12, %0 : vector<64x16xf32>
    %c0_10 = arith.constant 0 : index
    %c0_11 = arith.constant 0 : index
    %14 = vector.load %arg6[%c0_10, %c0_11] : memref<64x16xf32, #tpu.memory_space<vmem>>, vector<64x16xf32>
    tpu.vector_store %arg6[%c0_10, %c0_11], %13 {strides = array<i32>} : memref<64x16xf32, #tpu.memory_space<vmem>>, vector<64x16xf32>,
    return
  }
  func.func @transform_0(%arg0: i32) -> (i32, i32) {
    %c0_i32 = arith.constant 0 : i32
    %c0_i32_0 = arith.constant 0 : i32
    return %arg0, %c0_i32 : i32, i32
  }
  func.func @transform_1(%arg0: i32) -> (i32, i32) {
    %c0_i32 = arith.constant 0 : i32
    %c0_i32_0 = arith.constant 0 : i32
    %c0_i32_1 = arith.constant 0 : i32
    return %c0_i32, %c0_i32_0 : i32, i32
  }
  func.func @transform_2(%arg0: i32) -> (i32, i32) {
    %c0_i32 = arith.constant 0 : i32
    %c0_i32_0 = arith.constant 0 : i32
    %c0_i32_1 = arith.constant 0 : i32
    return %c0_i32, %c0_i32_0 : i32, i32
  }
  func.func @transform_3(%arg0: i32) -> (i32, i32) {
    %c0_i32 = arith.constant 0 : i32
    %c0_i32_0 = arith.constant 0 : i32
    %c0_i32_1 = arith.constant 0 : i32
    return %c0_i32, %c0_i32_0 : i32, i32
  }
  func.func @transform_4(%arg0: i32) -> (i32, i32) {
    %c0_i32 = arith.constant 0 : i32
    %c0_i32_0 = arith.constant 0 : i32
    %c0_i32_1 = arith.constant 0 : i32
    return %c0_i32, %c0_i32_0 : i32, i32
  }
  func.func @transform_5(%arg0: i32) -> (i32, i32) {
    %c0_i32 = arith.constant 0 : i32
    %c0_i32_0 = arith.constant 0 : i32
    return %arg0, %c0_i32 : i32, i32
  }
}

</mosaic_0001>

<bundles_post_ra>
// kernel: tpu_custom_call.1
= control target key start
LH: loop header
LB: loop body
LE: loop exit
PB: predicated region body
PF: predicated region fallthrough
CT: control target
= control target key end

     0   :  { %vm37_vm0 = vcmask 130048   ;;  %s595_s1 = inlined_call_operand.vmem [shape: f32[16,16], index: 1, kind: input, shape index: {}]   ;;  %s596_s0 = inlined_call_operand.vmem [shape: f32[64,16], index: 0, kind: input, shape index: {}]   ;;  %s597_s3 = inlined_call_operand.vmem [shape: f32[16,16], index: 3, kind: input, shape index: {}]   ;;  %s598_s2 = inlined_call_operand.vmem [shape: f32[1,16], index: 2, kind: input, shape index: {}]   ;;  %s599_s4 = inlined_call_operand.vmem [shape: f32[1,16], index: 4, kind: input, shape index: {}]   ;;  %s600_s5 = inlined_call_operand.vmem [shape: f32[64,16], index: 5, kind: output, shape index: {}]  }
   0x1   :  { %v29_v0 = vld [vmem:[%s595_s1 + $0x8] sm:$0xff]  ;;  %v28_v1 = vld [vmem:[%s595_s1] sm:$0xff]  ;;  %v494_v4 = vld [vmem:[%s596_s0 + $0x10] sm:$0xff] }
   0x2   :  { %v482_v2 = vld [vmem:[%s596_s0] sm:$0xff]  ;;  %379 = vmatprep.subr.mxu0 %v29_v0  ;;  %v489_v3 = vld [vmem:[%s596_s0 + $0x8] sm:$0xff]  ;;  %v503_v5 = vld [vmem:[%s596_s0 + $0x18] sm:$0xff] }
   0x3   :  { %383 = vmatprep.mubr.msk.f32.mxu0 %vm37_vm0, %v482_v2  ;;  %380 = vmatpush3.msra.mxu0 %v29_v0  ;;  %v508_v6 = vld [vmem:[%s596_s0 + $0x20] sm:$0xff]  ;;  %v517_v7 = vld [vmem:[%s596_s0 + $0x28] sm:$0xff]  ;;  %v522_v8 = vld [vmem:[%s596_s0 + $0x30] sm:$0xff] }
   0x4   :  { %381 = vmatprep.subr.mxu0 %v28_v1  ;;  %v531_v9 = vld [vmem:[%s596_s0 + $0x38] sm:$0xff]  ;;  %v176_v10 = vld [vmem:[%s597_s3 + $0x8] sm:$0xff]  ;;  %v175_v11 = vld [vmem:[%s597_s3] sm:$0xff] }
   0x5   :  { %382 = vmatpush3.msra.mxu0 %v28_v1  ;;  %395 = vmatprep.subr.mxu1 %v176_v10  ;;  %v341_v12 = vld [vmem:[%s598_s2] ss:$0 sm:$0xff] }
   0x6   :  { %384 = vmatmul.mubr.msk.f32.vlgmr.msra.gmra.mxu0 %vm37_vm0, %v489_v3  ;;  %396 = vmatpush3.msra.mxu1 %v176_v10  ;;  %v350_v37 = vld [vmem:[%s599_s4] ss:$0 sm:$0xff] }
   0x7   :  { %386 = vmatprep.mubr.msk.f32.mxu0 %vm37_vm0, %v494_v4  ;;  %397 = vmatprep.subr.mxu1 %v175_v11 }
   0x8   :  { %398 = vmatpush3.msra.mxu1 %v175_v11 }
   0xa   :  { %387 = vmatmul.mubr.msk.f32.gmra.mxu0 %vm37_vm0, %v503_v5 }
   0xb   :  { %389 = vmatprep.mubr.msk.f32.mxu0 %vm37_vm0, %v508_v6 }
   0xe   :  { %390 = vmatmul.mubr.msk.f32.gmra.mxu0 %vm37_vm0, %v517_v7 }
   0xf   :  { %392 = vmatprep.mubr.msk.f32.mxu0 %vm37_vm0, %v522_v8 }
  0x12   :  { %393 = vmatmul.mubr.msk.f32.gmra.mxu0 %vm37_vm0, %v531_v9 }
  0xc6   :  { %v385_v13 = vpop.f32.mrf.mxu0 }
  0xc7   :  { %v134_v14 = vadd.f32 %v385_v13, %v341_v12 }
  0xc8   :  { %v128_v15 = vpop.f32.mrf.mxu0 }
  0xc9   :  { %v129_v16 = vadd.f32 %v341_v12, %v128_v15 }
  0xca   :  { %v388_v17 = vpop.f32.mrf.mxu0 }
  0xcb   :  { %411 = vtanh.f32 %v129_v16  ;;  %v144_v18 = vadd.f32 %v388_v17, %v341_v12 }
  0xcc   :  { %413 = vtanh.f32 %v134_v14  ;;  %v138_v19 = vpop.f32.mrf.mxu0 }
  0xcd   :  { %v139_v20 = vadd.f32 %v341_v12, %v138_v19 }
  0xce   :  { %v391_v21 = vpop.f32.mrf.mxu0 }
  0xcf   :  { %415 = vtanh.f32 %v139_v20  ;;  %v154_v22 = vadd.f32 %v391_v21, %v341_v12 }
  0xd0   :  { %417 = vtanh.f32 %v144_v18  ;;  %v148_v23 = vpop.f32.mrf.mxu0 }
  0xd1   :  { %v149_v24 = vadd.f32 %v341_v12, %v148_v23 }
  0xd2   :  { %v394_v25 = vpop.f32.mrf.mxu0 }
  0xd3   :  { %419 = vtanh.f32 %v149_v24  ;;  %v164_v26 = vadd.f32 %v394_v25, %v341_v12 }
  0xd4   :  { %421 = vtanh.f32 %v154_v22  ;;  %v158_v27 = vpop.f32.mrf.mxu0 }
  0xd5   :  { %v159_v28 = vadd.f32 %v341_v12, %v158_v27 }
  0xd7   :  { %423 = vtanh.f32 %v159_v28 }
  0xd8   :  { %v412_v29 = vpop.eup %411  ;;  %425 = vtanh.f32 %v164_v26 }
  0xd9   :  { %v414_v30 = vpop.eup %413  ;;  %399 = vmatprep.mubr.msk.f32.mxu1 %vm37_vm0, %v412_v29 }
  0xda   :  { %400 = vmatmul.mubr.msk.f32.vlgmr.msra.gmra.mxu1 %vm37_vm0, %v414_v30 }
  0xdc   :  { %v416_v31 = vpop.eup %415 }
  0xdd   :  { %v418_v32 = vpop.eup %417  ;;  %402 = vmatprep.mubr.msk.f32.mxu1 %vm37_vm0, %v416_v31 }
  0xde   :  { %403 = vmatmul.mubr.msk.f32.gmra.mxu1 %vm37_vm0, %v418_v32 }
  0xe0   :  { %v420_v33 = vpop.eup %419 }
  0xe1   :  { %v422_v34 = vpop.eup %421  ;;  %405 = vmatprep.mubr.msk.f32.mxu1 %vm37_vm0, %v420_v33 }
  0xe2   :  { %406 = vmatmul.mubr.msk.f32.gmra.mxu1 %vm37_vm0, %v422_v34 }
  0xe4   :  { %v424_v35 = vpop.eup %423 }
  0xe5   :  { %v426_v36 = vpop.eup %425  ;;  %408 = vmatprep.mubr.msk.f32.mxu1 %vm37_vm0, %v424_v35 }
  0xe6   :  { %409 = vmatmul.mubr.msk.f32.gmra.mxu1 %vm37_vm0, %v426_v36 }
 0x19a   :  { %v401_v38 = vpop.f32.mrf.mxu1 }
 0x19b   :  { %v280_v39 = vadd.f32 %v401_v38, %v350_v37 }
 0x19c   :  { %v274_v40 = vpop.f32.mrf.mxu1 }
 0x19d   :  { %427 = vtanh.f32 %v280_v39  ;;  %v275_v41 = vadd.f32 %v350_v37, %v274_v40 }
 0x19e   :  { %v404_v42 = vpop.f32.mrf.mxu1 }
 0x19f   :  { %429 = vtanh.f32 %v275_v41  ;;  %v290_v43 = vadd.f32 %v404_v42, %v350_v37 }
 0x1a0   :  { %v284_v44 = vpop.f32.mrf.mxu1 }
 0x1a1   :  { %431 = vtanh.f32 %v290_v43  ;;  %v285_v45 = vadd.f32 %v350_v37, %v284_v44 }
 0x1a2   :  { %v407_v46 = vpop.f32.mrf.mxu1 }
 0x1a3   :  { %433 = vtanh.f32 %v285_v45  ;;  %v300_v47 = vadd.f32 %v407_v46, %v350_v37 }
 0x1a4   :  { %v294_v48 = vpop.f32.mrf.mxu1 }
 0x1a5   :  { %435 = vtanh.f32 %v300_v47  ;;  %v295_v49 = vadd.f32 %v350_v37, %v294_v48 }
 0x1a6   :  { %v410_v50 = vpop.f32.mrf.mxu1 }
 0x1a7   :  { %437 = vtanh.f32 %v295_v49  ;;  %v310_v51 = vadd.f32 %v410_v50, %v350_v37 }
 0x1a8   :  { %v304_v52 = vpop.f32.mrf.mxu1 }
 0x1a9   :  { %439 = vtanh.f32 %v310_v51  ;;  %v305_v53 = vadd.f32 %v350_v37, %v304_v52 }
 0x1aa   :  { %v428_v54 = vpop.eup %427 }
 0x1ab   :  { %v322_v55 = vadd.f32 %v428_v54, %v489_v3  ;;  %441 = vtanh.f32 %v305_v53 }
 0x1ac   :  { %v430_v56 = vpop.eup %429 }
 0x1ad   :  { %330 = vst.msk [vmem:[%s600_s5 + $0x8] sm:$0xff] %vm37_vm0, %v322_v55  ;;  %v321_v57 = vadd.f32 %v430_v56, %v482_v2 }
 0x1ae   :  { %v432_v58 = vpop.eup %431 }
 0x1af   :  { %329 = vst.msk [vmem:[%s600_s5] sm:$0xff] %vm37_vm0, %v321_v57  ;;  %v324_v59 = vadd.f32 %v432_v58, %v503_v5 }
 0x1b0   :  { %v434_v60 = vpop.eup %433 }
 0x1b1   :  { %332 = vst.msk [vmem:[%s600_s5 + $0x18] sm:$0xff] %vm37_vm0, %v324_v59  ;;  %v323_v61 = vadd.f32 %v434_v60, %v494_v4 }
 0x1b2   :  { %v436_v62 = vpop.eup %435 }
 0x1b3   :  { %331 = vst.msk [vmem:[%s600_s5 + $0x10] sm:$0xff] %vm37_vm0, %v323_v61  ;;  %v326_v63 = vadd.f32 %v436_v62, %v517_v7 }
 0x1b4   :  { %v438_v0 = vpop.eup %437 }
 0x1b5   :  { %334 = vst.msk [vmem:[%s600_s5 + $0x28] sm:$0xff] %vm37_vm0, %v326_v63  ;;  %v325_v1 = vadd.f32 %v438_v0, %v508_v6 }
 0x1b6   :  { %v440_v2 = vpop.eup %439 }
 0x1b7   :  { %333 = vst.msk [vmem:[%s600_s5 + $0x20] sm:$0xff] %vm37_vm0, %v325_v1  ;;  %v328_v3 = vadd.f32 %v440_v2, %v531_v9 }
 0x1b8   :  { %v442_v4 = vpop.eup %441 }
 0x1b9   :  { %336 = vst.msk [vmem:[%s600_s5 + $0x38] sm:$0xff] %vm37_vm0, %v328_v3  ;;  %v327_v5 = vadd.f32 %v442_v4, %v522_v8 }
 0x1bb   :  { %335 = vst.msk [vmem:[%s600_s5 + $0x30] sm:$0xff] %vm37_vm0, %v327_v5 }

</bundles_post_ra>
